<compile_context>
chip_gen: v7x
topology: tpu7x:2x2x1
jax: 0.10.0
libtpu: 0.0.40
codegen_flags: <defaults>
</compile_context>

<pallas_src>
import functools

import jax
import jax.numpy as jnp
from jax.experimental import pallas as pl
from jax.experimental.pallas import tpu as pltpu


def _round_up(x, n):
    return ((x + n - 1) // n) * n


# --------------------------------------------------------------------------
# Pass 1: conv-as-matmul + per-tile BatchNorm partial statistics
# --------------------------------------------------------------------------
def _conv_stats_kernel(p_ref, w_ref, y_ref, ps_ref, pq_ref):
    # p_ref: (tm, Kpad)  patches tile (compute_dtype)
    # w_ref: (Kpad, Cpad) reshaped conv weight (compute_dtype), constant across grid
    # y_ref: (tm, Cpad)  f32 pre-BN conv output tile
    # ps_ref/pq_ref: (8, Cpad) per-tile partial sum / sum-of-squares (row-broadcast)
    y = jnp.dot(p_ref[...], w_ref[...], preferred_element_type=jnp.float32)
    y_ref[...] = y
    s = jnp.sum(y, axis=0, keepdims=True)        # (1, Cpad)
    q = jnp.sum(y * y, axis=0, keepdims=True)    # (1, Cpad)
    # Broadcast to 8 sublanes so the store is a full, unmasked (8,128)-tile write.
    ps_ref[...] = jnp.broadcast_to(s, ps_ref.shape)
    pq_ref[...] = jnp.broadcast_to(q, pq_ref.shape)


# --------------------------------------------------------------------------
# Pass 2: normalize + affine + ReLU (embarrassingly parallel over M tiles)
# --------------------------------------------------------------------------
def _bn_act_kernel(y_ref, scale_ref, shift_ref, o_ref, *, is_activation):
    out = y_ref[...] * scale_ref[...] + shift_ref[...]
    if is_activation:
        out = jnp.maximum(out, 0.0)
    o_ref[...] = out.astype(o_ref.dtype)


# --------------------------------------------------------------------------
# Glue: im2col (pure data movement) in plain JAX
# --------------------------------------------------------------------------
def _im2col(x, kh, kw, stride, padding):
    # x: (N, C, H, W) -> patches: (N*Ho*Wo, C*kh*kw), column order matches
    # PyTorch weight.reshape(C_out, C_in*kh*kw) flattening (C slow; kh, kw fast).
    n, c, h, w = x.shape
    xp = jnp.pad(x, ((0, 0), (0, 0), (padding, padding), (padding, padding)))
    ho = (h + 2 * padding - kh) // stride + 1
    wo = (w + 2 * padding - kw) // stride + 1
    cols = []
    for i in range(kh):
        for j in range(kw):
            cols.append(xp[:, :, i:i + stride * ho:stride, j:j + stride * wo:stride])
    p = jnp.stack(cols, axis=0)          # (kh*kw, N, C, Ho, Wo)
    p = p.transpose(1, 3, 4, 2, 0)       # (N, Ho, Wo, C, kh*kw)
    p = p.reshape(n * ho * wo, c * kh * kw)
    return p, ho, wo


# --------------------------------------------------------------------------
# Wrapper: ConvBlock forward
# --------------------------------------------------------------------------
def conv_block_forward(x, weight, gamma, beta, *, stride, padding,
                       is_activation=True, eps=1e-5,
                       compute_dtype=jnp.float32, tile_m=256):
    """x: (N, C_in, H, W) NCHW; weight: (C_out, C_in, kh, kw) OIHW."""
    n, c_in, h, w = x.shape
    c_out, _, kh, kw = weight.shape

    patches, ho, wo = _im2col(x, kh, kw, stride, padding)   # (M, K)
    m, k = patches.shape

    # Lane/sublane-friendly padded sizes.
    k_pad = _round_up(k, 128)
    c_pad = _round_up(c_out, 128)
    tm = min(tile_m, _round_up(m, 8))        # rows per tile (multiple of 8)
    m_pad = _round_up(m, tm)
    grid_m = m_pad // tm

    # Zero-pad patches/weight: padded rows give y == 0, so they contribute nothing
    # to the BN sums (true divisor M is used), and padded K/Cout columns are inert.
    p_pad = jnp.pad(patches.astype(jnp.float32),
                    ((0, m_pad - m), (0, k_pad - k))).astype(compute_dtype)
    w_mat = weight.reshape(c_out, c_in * kh * kw).T.astype(jnp.float32)   # (K, Cout)
    w_pad = jnp.pad(w_mat, ((0, k_pad - k), (0, c_pad - c_out))).astype(compute_dtype)

    itemsize = jnp.dtype(compute_dtype).itemsize
    cost1 = pl.CostEstimate(
        flops=2 * m_pad * k_pad * c_pad,
        transcendentals=0,
        bytes_accessed=(m_pad * k_pad * itemsize + k_pad * c_pad * itemsize
                        + m_pad * c_pad * 4 + 2 * grid_m * 8 * c_pad * 4))

    y, psum, psq = pl.pallas_call(
        _conv_stats_kernel,
        out_shape=(jax.ShapeDtypeStruct((m_pad, c_pad), jnp.float32),
                   jax.ShapeDtypeStruct((grid_m * 8, c_pad), jnp.float32),
                   jax.ShapeDtypeStruct((grid_m * 8, c_pad), jnp.float32)),
        grid_spec=pltpu.PrefetchScalarGridSpec(
            num_scalar_prefetch=0,
            grid=(grid_m,),
            in_specs=[
                pl.BlockSpec((tm, k_pad), lambda i: (i, 0)),
                pl.BlockSpec((k_pad, c_pad), lambda i: (0, 0)),   # weight: fetched once
            ],
            out_specs=(
                pl.BlockSpec((tm, c_pad), lambda i: (i, 0)),
                pl.BlockSpec((8, c_pad), lambda i: (i, 0)),
                pl.BlockSpec((8, c_pad), lambda i: (i, 0)),
            )),
        compiler_params=pltpu.CompilerParams(
            dimension_semantics=("parallel",)),
        cost_estimate=cost1,
    )(p_pad, w_pad)

    # Tiny O(C) cross-tile reduction + BN affine folding (f32, outside the hot path).
    sum_y = jnp.sum(psum.reshape(grid_m, 8, c_pad)[:, 0, :], axis=0)     # (Cpad,)
    sumsq_y = jnp.sum(psq.reshape(grid_m, 8, c_pad)[:, 0, :], axis=0)    # (Cpad,)
    mean = sum_y / m
    var = jnp.maximum(sumsq_y / m - mean * mean, 0.0)                    # biased var
    g_p = jnp.pad(gamma.astype(jnp.float32), (0, c_pad - c_out), constant_values=1.0)
    b_p = jnp.pad(beta.astype(jnp.float32), (0, c_pad - c_out))
    scale_v = g_p * jax.lax.rsqrt(var + eps)
    shift_v = b_p - mean * scale_v
    scale = scale_v.reshape(1, c_pad)
    shift = shift_v.reshape(1, c_pad)

    cost2 = pl.CostEstimate(
        flops=2 * m_pad * c_pad,
        transcendentals=0,
        bytes_accessed=2 * m_pad * c_pad * 4 + 2 * c_pad * 4)

    out_flat = pl.pallas_call(
        functools.partial(_bn_act_kernel, is_activation=is_activation),
        out_shape=jax.ShapeDtypeStruct((m_pad, c_pad), jnp.float32),
        grid_spec=pltpu.PrefetchScalarGridSpec(
            num_scalar_prefetch=0,
            grid=(grid_m,),
            in_specs=[
                pl.BlockSpec((tm, c_pad), lambda i: (i, 0)),
                pl.BlockSpec((1, c_pad), lambda i: (0, 0)),
                pl.BlockSpec((1, c_pad), lambda i: (0, 0)),
            ],
            out_specs=pl.BlockSpec((tm, c_pad), lambda i: (i, 0))),
        compiler_params=pltpu.CompilerParams(
            dimension_semantics=("parallel",)),
        cost_estimate=cost2,
    )(y, scale, shift)

    # (Mpad, Cpad) -> slice valid rows/channels -> (N, C_out, Ho, Wo)
    out = out_flat[:m, :c_out].reshape(n, ho, wo, c_out).transpose(0, 3, 1, 2)
    return out.astype(x.dtype)


# --------------------------------------------------------------------------
# Pure-JAX reference (for correctness check)
# --------------------------------------------------------------------------
def conv_block_reference(x, weight, gamma, beta, *, stride, padding,
                         is_activation=True, eps=1e-5):
    y = jax.lax.conv_general_dilated(
        x, weight, window_strides=(stride, stride),
        padding=[(padding, padding), (padding, padding)],
        dimension_numbers=("NCHW", "OIHW", "NCHW"))
    mean = jnp.mean(y, axis=(0, 2, 3), keepdims=True)
    var = jnp.mean((y - mean) ** 2, axis=(0, 2, 3), keepdims=True)  # biased
    y = (y - mean) / jnp.sqrt(var + eps)
    y = y * gamma.reshape(1, -1, 1, 1) + beta.reshape(1, -1, 1, 1)
    if is_activation:
        y = jnp.maximum(y, 0.0)
    return y


if __name__ == "__main__":
    # Module config: ConvBlock(in_channels=4, out_channels=8, kersize=3,
    #                          stride=1, padding=1, is_activation=True)
    N, C_IN, H, W = 2, 4, 16, 16
    C_OUT, K, STRIDE, PAD = 8, 3, 1, 1

    key = jax.random.PRNGKey(0)
    kx, kw_, kg, kb = jax.random.split(key, 4)

    x = jax.random.normal(kx, (N, C_IN, H, W), dtype=jnp.float32)
    weight = 0.1 * jax.random.normal(kw_, (C_OUT, C_IN, K, K), dtype=jnp.float32)
    gamma = 1.0 + 0.1 * jax.random.normal(kg, (C_OUT,), dtype=jnp.float32)
    beta = 0.1 * jax.random.normal(kb, (C_OUT,), dtype=jnp.float32)

    ref = conv_block_reference(x, weight, gamma, beta,
                               stride=STRIDE, padding=PAD, is_activation=True)

    # f32 MXU path: bit-faithful to the PyTorch module semantics.
    out_f32 = jax.block_until_ready(conv_block_forward(
        x, weight, gamma, beta, stride=STRIDE, padding=PAD,
        is_activation=True, compute_dtype=jnp.float32))
    assert out_f32.shape == (N, C_OUT, H, W), out_f32.shape
    assert jnp.allclose(out_f32, ref, atol=1e-4, rtol=1e-4), \
        float(jnp.max(jnp.abs(out_f32 - ref)))

    # bf16 MXU path: high-throughput configuration (f32 accumulation, f32 BN math).
    out_bf16 = jax.block_until_ready(conv_block_forward(
        x, weight, gamma, beta, stride=STRIDE, padding=PAD,
        is_activation=True, compute_dtype=jnp.bfloat16))
    assert jnp.allclose(out_bf16, ref, atol=5e-2, rtol=5e-2), \
        float(jnp.max(jnp.abs(out_bf16 - ref)))

    # stride-2 / no-activation config (exercises M < tile_m and padding paths).
    out_s2 = jax.block_until_ready(conv_block_forward(
        x, weight, gamma, beta, stride=2, padding=PAD,
        is_activation=False, compute_dtype=jnp.float32))
    ref_s2 = conv_block_reference(x, weight, gamma, beta,
                                  stride=2, padding=PAD, is_activation=False)
    assert out_s2.shape == ref_s2.shape, (out_s2.shape, ref_s2.shape)
    assert jnp.allclose(out_s2, ref_s2, atol=1e-4, rtol=1e-4), \
        float(jnp.max(jnp.abs(out_s2 - ref_s2)))

    print("KERNEL_OK")
</pallas_src>

<mosaic_0001>
module attributes {stable_mosaic.version = 11 : i64} {
  func.func @_conv_stats_kernel(%arg0: i32, %arg1: memref<256x128xf32, #tpu.memory_space<vmem>>, %arg2: memref<128x128xf32, #tpu.memory_space<vmem>>, %arg3: memref<256x128xf32, #tpu.memory_space<vmem>>, %arg4: memref<8x128xf32, #tpu.memory_space<vmem>>, %arg5: memref<8x128xf32, #tpu.memory_space<vmem>>) attributes {dimension_semantics = [#tpu.dimension_semantics<parallel>], iteration_bounds = array<i64: 2>, scalar_prefetch = 0 : i64, scratch_operands = 0 : i64, tpu.core_type = #tpu.core_type<tc>, window_params = [{transform_indices = @transform_0, window_bounds = array<i64: 256, 128>}, {pipeline_mode = #tpu.pipeline_mode<synchronous>, transform_indices = @transform_1, window_bounds = array<i64: 128, 128>}, {transform_indices = @transform_2, window_bounds = array<i64: 256, 128>}, {transform_indices = @transform_3, window_bounds = array<i64: 8, 128>}, {transform_indices = @transform_4, window_bounds = array<i64: 8, 128>}]} {
    %c0 = arith.constant 0 : index
    %c0_0 = arith.constant 0 : index
    %0 = vector.load %arg1[%c0, %c0_0] : memref<256x128xf32, #tpu.memory_space<vmem>>, vector<256x128xf32>
    %c0_1 = arith.constant 0 : index
    %c0_2 = arith.constant 0 : index
    %1 = vector.load %arg2[%c0_1, %c0_2] : memref<128x128xf32, #tpu.memory_space<vmem>>, vector<128x128xf32>
    %cst = arith.constant dense<0.000000e+00> : vector<256x128xf32>
    %2 = tpu.matmul %0, %1, %cst {dimension_numbers = #tpu.dot_dimension_numbers<[1], [0], [0], [1], [0, 0, 1, 1], [], []>} : vector<256x128xf32>, vector<128x128xf32>, vector<256x128xf32> -> vector<256x128xf32>
    %c0_3 = arith.constant 0 : index
    %c0_4 = arith.constant 0 : index
    %3 = vector.load %arg3[%c0_3, %c0_4] : memref<256x128xf32, #tpu.memory_space<vmem>>, vector<256x128xf32>
    tpu.vector_store %arg3[%c0_3, %c0_4], %2 {strides = array<i32>} : memref<256x128xf32, #tpu.memory_space<vmem>>, vector<256x128xf32>,
    %cst_5 = arith.constant dense<0.000000e+00> : vector<128xf32>
    %4 = vector.multi_reduction <add>, %2, %cst_5 [0] : vector<256x128xf32> to vector<128xf32>
    %5 = vector.shape_cast %4 : vector<128xf32> to vector<1x128xf32>
    %6 = arith.mulf %2, %2 : vector<256x128xf32>
    %cst_6 = arith.constant dense<0.000000e+00> : vector<128xf32>
    %7 = vector.multi_reduction <add>, %6, %cst_6 [0] : vector<256x128xf32> to vector<128xf32>
    %8 = vector.shape_cast %7 : vector<128xf32> to vector<1x128xf32>
    %9 = vector.shape_cast %5 : vector<1x128xf32> to vector<1x128xf32>
    %10 = vector.broadcast %9 : vector<1x128xf32> to vector<8x128xf32>
    %c0_7 = arith.constant 0 : index
    %c0_8 = arith.constant 0 : index
    %11 = vector.load %arg4[%c0_7, %c0_8] : memref<8x128xf32, #tpu.memory_space<vmem>>, vector<8x128xf32>
    tpu.vector_store %arg4[%c0_7, %c0_8], %10 {strides = array<i32>} : memref<8x128xf32, #tpu.memory_space<vmem>>, vector<8x128xf32>,
    %12 = vector.shape_cast %8 : vector<1x128xf32> to vector<1x128xf32>
    %13 = vector.broadcast %12 : vector<1x128xf32> to vector<8x128xf32>
    %c0_9 = arith.constant 0 : index
    %c0_10 = arith.constant 0 : index
    %14 = vector.load %arg5[%c0_9, %c0_10] : memref<8x128xf32, #tpu.memory_space<vmem>>, vector<8x128xf32>
    tpu.vector_store %arg5[%c0_9, %c0_10], %13 {strides = array<i32>} : memref<8x128xf32, #tpu.memory_space<vmem>>, vector<8x128xf32>,
    return
  }
  func.func @transform_0(%arg0: i32) -> (i32, i32) {
    %c0_i32 = arith.constant 0 : i32
    %c0_i32_0 = arith.constant 0 : i32
    return %arg0, %c0_i32 : i32, i32
  }
  func.func @transform_1(%arg0: i32) -> (i32, i32) {
    %c0_i32 = arith.constant 0 : i32
    %c0_i32_0 = arith.constant 0 : i32
    %c0_i32_1 = arith.constant 0 : i32
    return %c0_i32, %c0_i32_0 : i32, i32
  }
  func.func @transform_2(%arg0: i32) -> (i32, i32) {
    %c0_i32 = arith.constant 0 : i32
    %c0_i32_0 = arith.constant 0 : i32
    return %arg0, %c0_i32 : i32, i32
  }
  func.func @transform_3(%arg0: i32) -> (i32, i32) {
    %c0_i32 = arith.constant 0 : i32
    %c0_i32_0 = arith.constant 0 : i32
    return %arg0, %c0_i32 : i32, i32
  }
  func.func @transform_4(%arg0: i32) -> (i32, i32) {
    %c0_i32 = arith.constant 0 : i32
    %c0_i32_0 = arith.constant 0 : i32
    return %arg0, %c0_i32 : i32, i32
  }
}

</mosaic_0001>

<bundles_post_ra>
// kernel: tpu_custom_call.1
= control target key start
LH: loop header
LB: loop body
LE: loop exit
PB: predicated region body
PF: predicated region fallthrough
CT: control target
= control target key end

     0   :  { %10 = vsyncpa [#allocation3], 0  ;;  %s1800_s0 = inlined_call_operand.hbm [shape: f32[512,128], index: 0, kind: input, shape index: {}]   ;;  %s1801_s1 = inlined_call_operand.hbm [shape: f32[128,128], index: 1, kind: input, shape index: {}]   ;;  %s1802_s2 = inlined_call_operand.hbm [shape: f32[512,128], index: 2, kind: output, shape index: {0}]   ;;  %s1803_s3 = inlined_call_operand.hbm [shape: f32[16,128], index: 3, kind: output, shape index: {1}]   ;;  %s1804_s4 = inlined_call_operand.hbm [shape: f32[16,128], index: 4, kind: output, shape index: {2}]  }
   0x1   :  { %12 = vsyncpa [#allocation3 + $0x1], 0 }
   0x2   :  { %13 = vsyncpa [#allocation6], 0 }
   0x3   :  { %14 = vsyncpa [#allocation4], 0 }
   0x4   :  { %16 = vsyncpa [#allocation4 + $0x1], 0 }
   0x5   :  { %17 = vsyncpa [#allocation9], 0 }
   0x6   :  { %19 = vsyncpa [#allocation9 + $0x1], 0  ;;  %s1353_s15 = smov 0   ;;  %s1355_s16 = smov 0  }
   0x7   :  { %s1357_s17 = smov 0   ;;  %s1359_s18 = smov 0  }
   0x8 LB: > { %s1374_s19 = sadd.s32 4294967295, %s1317_s18   ;;  %s858_s20 = sadd.s32 4294967294, %s1317_s18   ;;  %s1317_s18 = sphi %s1359_s18, %s1824_s18   ;;  %s1313_s17 = sphi %s1357_s17, %s1823_s17   ;;  %s1309_s16 = sphi %s1355_s16, %s1822_s16   ;;  %s1305_s15 = sphi %s1353_s15, %s1821_s15  }
   0x9   : > { %p45_p0 = scmp.ne.s32.totalorder %s1309_s16, %s1305_s15  ;;  %p1805_p1 = scmp.eq.s32.totalorder %s1374_s19, 0 }
   0xa   : > { %p96_p3 = scmp.eq.s32.totalorder %s858_s20, 1  ;;  %p859_p5 = scmp.ge.s32.totalorder %s1317_s18, 1 }
   0xb   : > { %p1385_p4 = por %p1805_p1, %p45_p0  ;;  %p155_p7 = scmp.lt.s32.totalorder %s1317_s18, 3 }
   0xc   : > { %p1390_p6 = por %p96_p3, %p45_p0  ;;  %s1319_s24 = smov [#allocation5]  }
   0xd   : > { %s1808_s21 = scalar_select %p1385_p4, 1, 0 }
   0xe   : > { %s1809_s22 = scalar_select %p1390_p6, 1, 0 }
   0xf   : > { %p1395_p8 = pnand %p859_p5, %p155_p7  ;;  %s167_s25 = sshll.u32 %s1319_s24, 4  ;;  %s1399_s25 = int_to_ptr.vmem [resolvable:$true] %s167_s25 }
  0x10   : > { %s1411_s27 = sadd.s32 1, %s1317_s18   ;;  %s32_s28 = sadd.s32 1, %s1313_s17 }
  0x11   : > { %s1810_s23 = scalar_select %p1395_p8, 1, 0 }
  0x12   : > { %p1070_p9 = pneg %p1395_p8  ;;  %s29_s29 = ssub.s32 %s1317_s18, %s1411_s27 }
  0x13   : > { %s1129_s6 = scalar_lea.hbm %s1801_s1, 2048 }
  0x14   : > { %p1406_p11 = pnand %p1070_p9, %p1805_p1  ;;  %p1130_p12 = scmp.ne.s32.totalorder %s1801_s1, %s1129_s6 }
  0x15   : > { %p1136_p5 = scmp.lt.u32.totalorder %s1129_s6, %s1801_s1 }
  0x16   : > { %p1131_p13 = pneg %p1406_p11 }
  0x18   : > { %p1132_p0 = pnand %p1131_p13, %p1130_p12 }
  0x1a   : > { %p1133_p3 = pneg %p1132_p0 }
  0x1c   : > { %p1138_p7 = pnand %p1136_p5, %p1133_p3 }
  0x1e   : > { %1141 = shalt.err (!%p1138_p7)
}
  0x1f   : > { %s1142_s11 = scalar_lea.vmem %s1399_s25, 2048  ;;  %p1150_p2 = scmp.lt.s32.totalorder %s1399_s25, %s1399_s25 }
  0x20   : > { %p1143_p9 = scmp.ne.s32.totalorder %s1399_s25, %s1142_s11  ;;  %p1151_p6 = scmp.lt.s32.totalorder %s1142_s11, %s1142_s11 }
  0x22   : > { %p1145_p10 = pnand %p1143_p9, %p1131_p13  ;;  %p1152_p4 = por %p1151_p6, %p1150_p2 }
  0x24   : > { %p1146_p1 = pneg %p1145_p10 }
  0x26   : > { %p1153_p8 = pnand %p1152_p4, %p1146_p1 }
  0x28   : > { %1156 = shalt.err (!%p1153_p8)
}
  0x29   : > { %s1320_s12 = smov 128   ;;  %s1321_s13 = smov 8  }
  0x2a   : > { %1073 = dma.hbm_to_vmem [thread:$0]  (!%p1406_p11), %s1801_s1, 2048, %s1399_s25, [#allocation6], %s1320_s12, %s1320_s12, %s1321_s13  }
  0x2b   : > { %p30_p1 = scmp.eq.s32.totalorder %s29_s29, 0  ;;  %p39_p2 = scmp.ne.s32.totalorder %s1313_s17, %s1309_s16 }
  0x2c   : > { %p40_p4 = scmp.eq.s32.totalorder %s1317_s18, 0  ;;  %p1089_p6 = scmp.lt.s32.totalorder %s1317_s18, 2 }
  0x2d   : > { %s1445_s30 = scalar_select %p30_p1, %s1313_s17, %s32_s28  }
  0x2e   : > { %p41_p8 = por %p40_p4, %p39_p2  ;;  %p1812_p10 = scmp.eq.s32.totalorder %s1374_s19, 1 }
  0x2f   : > { %s181_s26 = sand.u32 1, %s1313_s17   ;;  %s880_s6 = sshll.u32 %s1317_s18, 12 }
  0x30   : > { %p1449_p12 = por %p1812_p10, %p39_p2  ;;  %s862_s7 = sshll.u32 %s181_s26, 8 }
  0x31   : > { %s1458_s10 = scalar_lea.hbm %s1800_s0, %s880_s6  ;;  %s185_s25 = scalar_lea.vmem [#allocation2], %s862_s7 }
  0x32   : > { %s192_s28 = sshll.u32 %s185_s25, 4  ;;  %p1460_p11 = pnand %p1089_p6, %p41_p8  ;;  %s1464_s28 = int_to_ptr.vmem [resolvable:$true] %s192_s28 }
  0x33   : > { %s1466_s11 = scalar_lea.sflag [#allocation3], %s181_s26  ;;  %s1157_s14 = scalar_lea.hbm %s1458_s10, 4096 }
  0x34   : > { %p1158_p13 = scmp.ne.s32.totalorder %s1458_s10, %s1157_s14  ;;  %p1159_p0 = pneg %p1460_p11 }
  0x35   : > { %s1162_s7 = scalar_lea.hbm %s1800_s0, 8192  ;;  %p1163_p7 = scmp.lt.u32.totalorder %s1458_s10, %s1800_s0 }
  0x36   : > { %p1160_p3 = pnand %p1159_p0, %p1158_p13  ;;  %p1164_p9 = scmp.lt.u32.totalorder %s1162_s7, %s1157_s14 }
  0x37   : > { %p1166_p2 = scmp.lt.u32.totalorder %s1157_s14, %s1458_s10 }
  0x38   : > { %p1161_p5 = pneg %p1160_p3  ;;  %p1165_p1 = por %p1164_p9, %p1163_p7 }
  0x3a   : > { %p1167_p4 = por %p1166_p2, %p1165_p1 }
  0x3c   : > { %p1168_p6 = pnand %p1167_p4, %p1161_p5 }
  0x3e   : > { %1171 = shalt.err (!%p1168_p6)
}
  0x3f   : > { %s1172_s26 = scalar_lea.vmem %s1464_s28, 4096  ;;  %s1322_s25 = smov [#allocation2]  }
  0x40   : > { %p1173_p8 = scmp.ne.s32.totalorder %s1464_s28, %s1172_s26  ;;  %s1177_s24 = sshll.u32 %s1322_s25, 4  ;;  %s1178_s24 = int_to_ptr.vmem [resolvable:$false] %s1177_s24 }
  0x41   : > { %s1179_s6 = scalar_lea.vmem %s1178_s24, 8192  ;;  %p1180_p3 = scmp.lt.s32.totalorder %s1464_s28, %s1178_s24 }
  0x42   : > { %p1175_p10 = pnand %p1173_p8, %p1159_p0  ;;  %p1181_p7 = scmp.lt.s32.totalorder %s1179_s6, %s1172_s26 }
  0x44   : > { %p1176_p13 = pneg %p1175_p10  ;;  %p1182_p9 = por %p1181_p7, %p1180_p3 }
  0x46   : > { %p1183_p1 = pnand %p1182_p9, %p1176_p13 }
  0x48   : > { %1186 = shalt.err (!%p1183_p1)
}
  0x49   : > { %1077 = dma.hbm_to_vmem [thread:$0]  (!%p1460_p11), %s1458_s10, 4096, %s1464_s28, %s1466_s11, %s1320_s12, %s1320_s12, %s1321_s13  }
  0x4a   : > { %p1815_p0 = scmp.ne.s32.totalorder %s1810_s23, 0 }
  0x4b   : > { %s1500_s14 = sand.u32 (!%p1815_p0), 1, %s1309_s16   ;;  %p1816_p5 = scmp.ne.s32.totalorder (!%p1815_p0), %s1808_s21, 0 }
  0x4c   : > { %204 = sbr.rel (%p1815_p0) target bundleno = 458 (0x1ca), region = 28  ;;  %s866_s7 = sshll.u32 (!%p1815_p0), %s1500_s14, 8 }
  0x4d   : > { %s207_s8 = scalar_lea.sflag (!%p1815_p0), [#allocation3], %s1500_s14  ;;  %s1506_s29 = scalar_lea.vmem (!%p1815_p0), [#allocation2], %s866_s7 }
  0x53   : > { %1288 = dma.done.wait (%p1816_p5), %s207_s8, 4096  }
  0x54   : > { %1290 = vsyncadd (%p1816_p5), %s207_s8, 4294963200  ;;  %p1817_p11 = scmp.eq.s32.totalorder %s1374_s19, 0 }
  0x56   : > { %1292 = dma.done.wait (%p1817_p11), [#allocation6], 2048   ;;  %p1818_p2 = pmov %p1817_p11 }
  0x57   : > { %v283_v0 = vld [vmem:[#allocation5] sm:$0xff]  ;;  %v284_v1 = vld [vmem:[#allocation5 + $0x8] sm:$0xff]  ;;  %v285_v2 = vld [vmem:[#allocation5 + $0x10] sm:$0xff]  ;;  %s1552_s21 = scalar_lea.vmem [#allocation7], %s866_s7  ;;  %s881_s23 = sshll.u32 %s1374_s19, 12 }
  0x58   : > { %1294 = vsyncadd (%p1818_p2), [#allocation6], 4294965248  ;;  %v1010_v3 = vpack.c.bf16 %v284_v1, %v283_v0  ;;  %v286_v4 = vld [vmem:[#allocation5 + $0x18] sm:$0xff]  ;;  %v287_v6 = vld [vmem:[#allocation5 + $0x20] sm:$0xff]  ;;  %s688_s12 = sshll.u32 %s1552_s21, 4  ;;  %s1627_s28 = scalar_lea.hbm %s1802_s2, %s881_s23  ;;  %s1629_s12 = int_to_ptr.vmem [resolvable:$true] %s688_s12 }
  0x59   : > { %v1014_v5 = vpack.c.bf16 %v286_v4, %v285_v2  ;;  %v288_v7 = vld [vmem:[#allocation5 + $0x28] sm:$0xff]  ;;  %v251_v9 = vld [vmem:[%s1506_s29] sm:$0xff]  ;;  %v289_v10 = vld [vmem:[#allocation5 + $0x30] sm:$0xff]  ;;  %s665_s11 = scalar_lea.sflag [#allocation4], %s1500_s14  ;;  %s1187_s9 = scalar_lea.vmem %s1629_s12, 4096 }
  0x5a   : > { %1011 = vmatprep.subr.bf16.mxu0 %v1010_v3  ;;  %1042 = vmatprep.subr.bf16.mxu1 %v1010_v3  ;;  %v1018_v8 = vpack.c.bf16 %v288_v7, %v287_v6  ;;  %v290_v11 = vld [vmem:[#allocation5 + $0x38] sm:$0xff]  ;;  %v291_v13 = vld [vmem:[#allocation5 + $0x40] sm:$0xff]  ;;  %v292_v14 = vld [vmem:[#allocation5 + $0x48] sm:$0xff]  ;;  %p1188_p4 = scmp.ne.s32.totalorder %s1629_s12, %s1187_s9  ;;  %s1323_s26 = smov [#allocation7]  }
  0x5b   : > { %1013 = vmatpush3.bf16.msra.mxu0 %v1010_v3  ;;  %1050 = vmatpush3.bf16.msra.mxu1 %v1010_v3  ;;  %v1022_v12 = vpack.c.bf16 %v290_v11, %v289_v10  ;;  %v267_v15 = vld [vmem:[%s1506_s29 + $0x80] sm:$0xff]  ;;  %v1026_v16 = vpack.c.bf16 %v292_v14, %v291_v13  ;;  %v293_v17 = vld [vmem:[#allocation5 + $0x50] sm:$0xff]  ;;  %v294_v18 = vld [vmem:[#allocation5 + $0x58] sm:$0xff]  ;;  %s1191_s25 = sshll.u32 %s1323_s26, 4  ;;  %s1192_s25 = int_to_ptr.vmem [resolvable:$false] %s1191_s25 }
  0x5c   : > { %1015 = vmatprep.subr.bf16.mxu0 %v1014_v5  ;;  %1043 = vmatprep.subr.bf16.mxu1 %v1014_v5  ;;  %v1030_v19 = vpack.c.bf16 %v294_v18, %v293_v17  ;;  %v295_v20 = vld [vmem:[#allocation5 + $0x60] sm:$0xff]  ;;  %v296_v21 = vld [vmem:[#allocation5 + $0x68] sm:$0xff]  ;;  %v297_v23 = vld [vmem:[#allocation5 + $0x70] sm:$0xff]  ;;  %p1189_p6 = pnand %p1188_p4, %p1449_p12  ;;  %s1193_s24 = scalar_lea.vmem %s1192_s25, 8192 }
  0x5d   : > { %962 = vmatprep.mubr.f32.mxu0 %v251_v9  ;;  %986 = vmatprep.mubr.f32.mxu1 %v267_v15  ;;  %v1034_v22 = vpack.c.bf16 %v296_v21, %v295_v20  ;;  %v298_v24 = vld [vmem:[#allocation5 + $0x78] sm:$0xff]  ;;  %v252_v26 = vld [vmem:[%s1506_s29 + $0x8] sm:$0xff]  ;;  %v253_v28 = vld [vmem:[%s1506_s29 + $0x10] sm:$0xff]  ;;  %p1194_p10 = scmp.lt.s32.totalorder %s1629_s12, %s1192_s25  ;;  %p1195_p13 = scmp.lt.s32.totalorder %s1193_s24, %s1187_s9 }
  0x5e   : > { %v1038_v25 = vpack.c.bf16 %v298_v24, %v297_v23  ;;  %v268_v27 = vld [vmem:[%s1506_s29 + $0x88] sm:$0xff]  ;;  %v269_v29 = vld [vmem:[%s1506_s29 + $0x90] sm:$0xff]  ;;  %v254_v30 = vld [vmem:[%s1506_s29 + $0x18] sm:$0xff]  ;;  %p1190_p8 = pneg %p1189_p6 }
  0x5f   : > { %1017 = vmatpush3.bf16.msra.mxu0 %v1014_v5  ;;  %1051 = vmatpush3.bf16.msra.mxu1 %v1014_v5  ;;  %v270_v31 = vld [vmem:[%s1506_s29 + $0x98] sm:$0xff]  ;;  %v255_v32 = vld [vmem:[%s1506_s29 + $0x20] sm:$0xff]  ;;  %v256_v34 = vld [vmem:[%s1506_s29 + $0x28] sm:$0xff]  ;;  %p1196_p3 = por %p1195_p13, %p1194_p10 }
  0x60   : > { %1019 = vmatprep.subr.bf16.mxu0 %v1018_v8  ;;  %1044 = vmatprep.subr.bf16.mxu1 %v1018_v8  ;;  %v271_v33 = vld [vmem:[%s1506_s29 + $0xa0] sm:$0xff]  ;;  %v272_v35 = vld [vmem:[%s1506_s29 + $0xa8] sm:$0xff]  ;;  %v257_v36 = vld [vmem:[%s1506_s29 + $0x30] sm:$0xff] }
  0x61   : > { %v273_v37 = vld [vmem:[%s1506_s29 + $0xb0] sm:$0xff]  ;;  %v258_v38 = vld [vmem:[%s1506_s29 + $0x38] sm:$0xff]  ;;  %v259_v40 = vld [vmem:[%s1506_s29 + $0x40] sm:$0xff]  ;;  %p1197_p7 = pnand %p1196_p3, %p1190_p8 }
  0x62   : > { %v274_v39 = vld [vmem:[%s1506_s29 + $0xb8] sm:$0xff]  ;;  %v275_v41 = vld [vmem:[%s1506_s29 + $0xc0] sm:$0xff]  ;;  %v260_v42 = vld [vmem:[%s1506_s29 + $0x48] sm:$0xff] }
  0x63   : > { %1021 = vmatpush3.bf16.msra.mxu0 %v1018_v8  ;;  %1052 = vmatpush3.bf16.msra.mxu1 %v1018_v8  ;;  %v276_v43 = vld [vmem:[%s1506_s29 + $0xc8] sm:$0xff]  ;;  %v261_v44 = vld [vmem:[%s1506_s29 + $0x50] sm:$0xff]  ;;  %v262_v46 = vld [vmem:[%s1506_s29 + $0x58] sm:$0xff] }
  0x64   : > { %1023 = vmatprep.subr.bf16.mxu0 %v1022_v12  ;;  %1045 = vmatprep.subr.bf16.mxu1 %v1022_v12  ;;  %v277_v45 = vld [vmem:[%s1506_s29 + $0xd0] sm:$0xff]  ;;  %v278_v47 = vld [vmem:[%s1506_s29 + $0xd8] sm:$0xff]  ;;  %v263_v48 = vld [vmem:[%s1506_s29 + $0x60] sm:$0xff] }
  0x65   : > { %v279_v49 = vld [vmem:[%s1506_s29 + $0xe0] sm:$0xff]  ;;  %v264_v50 = vld [vmem:[%s1506_s29 + $0x68] sm:$0xff]  ;;  %v265_v52 = vld [vmem:[%s1506_s29 + $0x70] sm:$0xff] }
  0x66   : > { %v280_v51 = vld [vmem:[%s1506_s29 + $0xe8] sm:$0xff]  ;;  %v281_v53 = vld [vmem:[%s1506_s29 + $0xf0] sm:$0xff]  ;;  %v266_v54 = vld [vmem:[%s1506_s29 + $0x78] sm:$0xff] }
  0x67   : > { %1025 = vmatpush3.bf16.msra.mxu0 %v1022_v12  ;;  %1053 = vmatpush3.bf16.msra.mxu1 %v1022_v12  ;;  %v282_v55 = vld [vmem:[%s1506_s29 + $0xf8] sm:$0xff] }
  0x68   : > { %1027 = vmatprep.subr.bf16.mxu0 %v1026_v16  ;;  %1046 = vmatprep.subr.bf16.mxu1 %v1026_v16 }
  0x6b   : > { %1029 = vmatpush3.bf16.msra.mxu0 %v1026_v16  ;;  %1054 = vmatpush3.bf16.msra.mxu1 %v1026_v16 }
  0x6c   : > { %1031 = vmatprep.subr.bf16.mxu0 %v1030_v19  ;;  %1047 = vmatprep.subr.bf16.mxu1 %v1030_v19 }
  0x6f   : > { %1033 = vmatpush3.bf16.msra.mxu0 %v1030_v19  ;;  %1055 = vmatpush3.bf16.msra.mxu1 %v1030_v19 }
  0x70   : > { %1035 = vmatprep.subr.bf16.mxu0 %v1034_v22  ;;  %1048 = vmatprep.subr.bf16.mxu1 %v1034_v22 }
  0x73   : > { %1037 = vmatpush3.bf16.msra.mxu0 %v1034_v22  ;;  %1056 = vmatpush3.bf16.msra.mxu1 %v1034_v22 }
  0x74   : > { %1039 = vmatprep.subr.bf16.mxu0 %v1038_v25  ;;  %1049 = vmatprep.subr.bf16.mxu1 %v1038_v25 }
  0x77   : > { %1041 = vmatpush3.bf16.msra.mxu0 %v1038_v25  ;;  %1057 = vmatpush3.bf16.msra.mxu1 %v1038_v25 }
  0x7a   : > { %963 = vmatmul.mubr.f32.vlgmr.msra.gmra.mrb[0].mxu0 %v252_v26  ;;  %987 = vmatmul.mubr.f32.vlgmr.msra.gmra.mrb[0].mxu1 %v268_v27 }
  0x7b   : > { %965 = vmatprep.mubr.f32.mxu0 %v253_v28  ;;  %989 = vmatprep.mubr.f32.mxu1 %v269_v29 }
  0x7e   : > { %966 = vmatmul.mubr.f32.gmra.mrb[2].mxu0 %v254_v30  ;;  %990 = vmatmul.mubr.f32.gmra.mrb[2].mxu1 %v270_v31 }
  0x7f   : > { %968 = vmatprep.mubr.f32.mxu0 %v255_v32  ;;  %992 = vmatprep.mubr.f32.mxu1 %v271_v33 }
  0x82   : > { %969 = vmatmul.mubr.f32.gmra.mrb[4].mxu0 %v256_v34  ;;  %993 = vmatmul.mubr.f32.gmra.mrb[4].mxu1 %v272_v35 }
  0x83   : > { %971 = vmatprep.mubr.f32.mxu0 %v257_v36  ;;  %995 = vmatprep.mubr.f32.mxu1 %v273_v37 }
  0x86   : > { %972 = vmatmul.mubr.f32.gmra.mrb[6].mxu0 %v258_v38  ;;  %996 = vmatmul.mubr.f32.gmra.mrb[6].mxu1 %v274_v39 }
  0x87   : > { %974 = vmatprep.mubr.f32.mxu0 %v259_v40  ;;  %998 = vmatprep.mubr.f32.mxu1 %v275_v41 }
  0x8a   : > { %975 = vmatmul.mubr.f32.gmra.mrb[8].mxu0 %v260_v42  ;;  %999 = vmatmul.mubr.f32.gmra.mrb[8].mxu1 %v276_v43 }
  0x8b   : > { %977 = vmatprep.mubr.f32.mxu0 %v261_v44  ;;  %1001 = vmatprep.mubr.f32.mxu1 %v277_v45 }
  0x8e   : > { %978 = vmatmul.mubr.f32.gmra.mrb[10].mxu0 %v262_v46  ;;  %1002 = vmatmul.mubr.f32.gmra.mrb[10].mxu1 %v278_v47 }
  0x8f   : > { %980 = vmatprep.mubr.f32.mxu0 %v263_v48  ;;  %1004 = vmatprep.mubr.f32.mxu1 %v279_v49 }
  0x92   : > { %981 = vmatmul.mubr.f32.gmra.mrb[12].mxu0 %v264_v50  ;;  %1005 = vmatmul.mubr.f32.gmra.mrb[12].mxu1 %v280_v51 }
  0x93   : > { %983 = vmatprep.mubr.f32.mxu0 %v265_v52  ;;  %1007 = vmatprep.mubr.f32.mxu1 %v281_v53 }
  0x96   : > { %984 = vmatmul.mubr.f32.gmra.mrb[14].mxu0 %v266_v54  ;;  %1008 = vmatmul.mubr.f32.gmra.mrb[14].mxu1 %v282_v55 }
 0x14d   : > { %v964_v56 = vpop.f32.mrb[0].mxu0  ;;  %v1548_v57 = vpop.f32.mrb[0].mxu1 }
 0x14e   : > { %525 = vst [vmem:[%s1552_s21 + $0x8] sm:$0xff] %v964_v56  ;;  %v594_v58 = vmul.f32 %v964_v56, %v964_v56  ;;  %v365_v59 = vpop.f32.mrb[1].mxu0  ;;  %541 = vst [vmem:[%s1552_s21 + $0x88] sm:$0xff] %v1548_v57  ;;  %v1557_v60 = vpop.f32.mrb[1].mxu1 }
 0x14f   : > { %524 = vst [vmem:[%s1552_s21] sm:$0xff] %v365_v59  ;;  %v556_v61 = vadd.f32 %v964_v56, %v365_v59  ;;  %v593_v62 = vmul.f32 %v365_v59, %v365_v59  ;;  %540 = vst [vmem:[%s1552_s21 + $0x80] sm:$0xff] %v1557_v60 }
 0x151   : > { %v625_v63 = vadd.f32 %v594_v58, %v593_v62  ;;  %v967_v0 = vpop.f32.mrb[2].mxu0  ;;  %v1562_v1 = vpop.f32.mrb[2].mxu1 }
 0x152   : > { %527 = vst [vmem:[%s1552_s21 + $0x18] sm:$0xff] %v967_v0  ;;  %v375_v2 = vpop.f32.mrb[3].mxu0  ;;  %543 = vst [vmem:[%s1552_s21 + $0x98] sm:$0xff] %v1562_v1  ;;  %v1567_v3 = vpop.f32.mrb[3].mxu1  ;;  %v596_v6 = vmul.f32 %v967_v0, %v967_v0 }
 0x153   : > { %526 = vst [vmem:[%s1552_s21 + $0x10] sm:$0xff] %v375_v2  ;;  %v557_v4 = vadd.f32 %v556_v61, %v375_v2  ;;  %v595_v5 = vmul.f32 %v375_v2, %v375_v2  ;;  %542 = vst [vmem:[%s1552_s21 + $0x90] sm:$0xff] %v1567_v3 }
 0x155   : > { %v626_v7 = vadd.f32 %v625_v63, %v595_v5  ;;  %v970_v8 = vpop.f32.mrb[4].mxu0  ;;  %v558_v9 = vadd.f32 %v967_v0, %v557_v4  ;;  %v1572_v10 = vpop.f32.mrb[4].mxu1 }
 0x156   : > { %529 = vst [vmem:[%s1552_s21 + $0x28] sm:$0xff] %v970_v8  ;;  %v385_v11 = vpop.f32.mrb[5].mxu0  ;;  %545 = vst [vmem:[%s1552_s21 + $0xa8] sm:$0xff] %v1572_v10  ;;  %v1577_v12 = vpop.f32.mrb[5].mxu1  ;;  %v598_v16 = vmul.f32 %v970_v8, %v970_v8 }
 0x157   : > { %528 = vst [vmem:[%s1552_s21 + $0x20] sm:$0xff] %v385_v11  ;;  %v559_v13 = vadd.f32 %v558_v9, %v385_v11  ;;  %v597_v14 = vmul.f32 %v385_v11, %v385_v11  ;;  %v627_v15 = vadd.f32 %v626_v7, %v596_v6  ;;  %544 = vst [vmem:[%s1552_s21 + $0xa0] sm:$0xff] %v1577_v12 }
 0x159   : > { %v628_v17 = vadd.f32 %v627_v15, %v597_v14  ;;  %v973_v18 = vpop.f32.mrb[6].mxu0  ;;  %v560_v19 = vadd.f32 %v970_v8, %v559_v13  ;;  %v1582_v20 = vpop.f32.mrb[6].mxu1 }
 0x15a   : > { %531 = vst [vmem:[%s1552_s21 + $0x38] sm:$0xff] %v973_v18  ;;  %v395_v21 = vpop.f32.mrb[7].mxu0  ;;  %547 = vst [vmem:[%s1552_s21 + $0xb8] sm:$0xff] %v1582_v20  ;;  %v1587_v22 = vpop.f32.mrb[7].mxu1  ;;  %v600_v26 = vmul.f32 %v973_v18, %v973_v18 }
 0x15b   : > { %530 = vst [vmem:[%s1552_s21 + $0x30] sm:$0xff] %v395_v21  ;;  %v561_v23 = vadd.f32 %v560_v19, %v395_v21  ;;  %v599_v24 = vmul.f32 %v395_v21, %v395_v21  ;;  %v629_v25 = vadd.f32 %v628_v17, %v598_v16  ;;  %546 = vst [vmem:[%s1552_s21 + $0xb0] sm:$0xff] %v1587_v22 }
 0x15d   : > { %v630_v27 = vadd.f32 %v629_v25, %v599_v24  ;;  %v976_v28 = vpop.f32.mrb[8].mxu0  ;;  %v562_v29 = vadd.f32 %v973_v18, %v561_v23  ;;  %v1592_v30 = vpop.f32.mrb[8].mxu1 }
 0x15e   : > { %533 = vst [vmem:[%s1552_s21 + $0x48] sm:$0xff] %v976_v28  ;;  %v405_v31 = vpop.f32.mrb[9].mxu0  ;;  %549 = vst [vmem:[%s1552_s21 + $0xc8] sm:$0xff] %v1592_v30  ;;  %v1597_v32 = vpop.f32.mrb[9].mxu1  ;;  %v602_v36 = vmul.f32 %v976_v28, %v976_v28 }
 0x15f   : > { %532 = vst [vmem:[%s1552_s21 + $0x40] sm:$0xff] %v405_v31  ;;  %v563_v33 = vadd.f32 %v562_v29, %v405_v31  ;;  %v601_v34 = vmul.f32 %v405_v31, %v405_v31  ;;  %v631_v35 = vadd.f32 %v630_v27, %v600_v26  ;;  %548 = vst [vmem:[%s1552_s21 + $0xc0] sm:$0xff] %v1597_v32 }
 0x161   : > { %v632_v37 = vadd.f32 %v631_v35, %v601_v34  ;;  %v979_v38 = vpop.f32.mrb[10].mxu0  ;;  %v564_v39 = vadd.f32 %v976_v28, %v563_v33  ;;  %v1602_v40 = vpop.f32.mrb[10].mxu1 }
 0x162   : > { %535 = vst [vmem:[%s1552_s21 + $0x58] sm:$0xff] %v979_v38  ;;  %v415_v41 = vpop.f32.mrb[11].mxu0  ;;  %551 = vst [vmem:[%s1552_s21 + $0xd8] sm:$0xff] %v1602_v40  ;;  %v1607_v42 = vpop.f32.mrb[11].mxu1  ;;  %v604_v46 = vmul.f32 %v979_v38, %v979_v38 }
 0x163   : > { %534 = vst [vmem:[%s1552_s21 + $0x50] sm:$0xff] %v415_v41  ;;  %v565_v43 = vadd.f32 %v564_v39, %v415_v41  ;;  %v603_v44 = vmul.f32 %v415_v41, %v415_v41  ;;  %v633_v45 = vadd.f32 %v632_v37, %v602_v36  ;;  %550 = vst [vmem:[%s1552_s21 + $0xd0] sm:$0xff] %v1607_v42 }
 0x165   : > { %v634_v47 = vadd.f32 %v633_v45, %v603_v44  ;;  %v982_v48 = vpop.f32.mrb[12].mxu0  ;;  %v566_v49 = vadd.f32 %v979_v38, %v565_v43  ;;  %v1612_v50 = vpop.f32.mrb[12].mxu1 }
 0x166   : > { %537 = vst [vmem:[%s1552_s21 + $0x68] sm:$0xff] %v982_v48  ;;  %v425_v51 = vpop.f32.mrb[13].mxu0  ;;  %553 = vst [vmem:[%s1552_s21 + $0xe8] sm:$0xff] %v1612_v50  ;;  %v1619_v52 = vpop.f32.mrb[13].mxu1  ;;  %v606_v56 = vmul.f32 %v982_v48, %v982_v48 }
 0x167   : > { %536 = vst [vmem:[%s1552_s21 + $0x60] sm:$0xff] %v425_v51  ;;  %v567_v53 = vadd.f32 %v566_v49, %v425_v51  ;;  %v605_v54 = vmul.f32 %v425_v51, %v425_v51  ;;  %v635_v55 = vadd.f32 %v634_v47, %v604_v46  ;;  %552 = vst [vmem:[%s1552_s21 + $0xe0] sm:$0xff] %v1619_v52 }
 0x169   : > { %v636_v58 = vadd.f32 %v635_v55, %v605_v54  ;;  %v985_v59 = vpop.f32.mrb[14].mxu0  ;;  %v568_v61 = vadd.f32 %v982_v48, %v567_v53  ;;  %v1631_v62 = vpop.f32.mrb[14].mxu1 }
 0x16a   : > { %539 = vst [vmem:[%s1552_s21 + $0x78] sm:$0xff] %v985_v59  ;;  %v435_v63 = vpop.f32.mrb[15].mxu0  ;;  %555 = vst [vmem:[%s1552_s21 + $0xf8] sm:$0xff] %v1631_v62  ;;  %v1636_v0 = vpop.f32.mrb[15].mxu1 }
 0x16b   : > { %538 = vst [vmem:[%s1552_s21 + $0x70] sm:$0xff] %v435_v63  ;;  %v569_v2 = vadd.f32 %v568_v61, %v435_v63  ;;  %v607_v4 = vmul.f32 %v435_v63, %v435_v63  ;;  %v637_v5 = vadd.f32 %v636_v58, %v606_v56  ;;  %554 = vst [vmem:[%s1552_s21 + $0xf0] sm:$0xff] %v1636_v0 }
 0x16c   : > { %1200 = shalt.err (!%p1197_p7)
}
 0x16d   : > { %s1201_s6 = scalar_lea.hbm %s1627_s28, 4096  ;;  %s1205_s29 = scalar_lea.hbm %s1802_s2, 8192 }
 0x16e   : > { %p1202_p9 = scmp.ne.s32.totalorder %s1627_s28, %s1201_s6  ;;  %p1206_p5 = scmp.lt.u32.totalorder %s1627_s28, %s1802_s2 }
 0x16f   : > { %p1207_p11 = scmp.lt.u32.totalorder %s1205_s29, %s1201_s6  ;;  %p1209_p4 = scmp.lt.u32.totalorder %s1201_s6, %s1627_s28 }
 0x170   : > { %p1203_p1 = pnand %p1202_p9, %p1449_p12 }
 0x171   : > { %p1208_p2 = por %p1207_p11, %p1206_p5 }
 0x172   : > { %p1204_p0 = pneg %p1203_p1 }
 0x173   : > { %p1210_p6 = por %p1209_p4, %p1208_p2 }
 0x175   : > { %p1211_p8 = pnand %p1210_p6, %p1204_p0 }
 0x177   : > { %1214 = shalt.err (!%p1211_p8)
}
 0x178   : > { %s1324_s13 = smov 128   ;;  %s1325_s10 = smov 8   ;;  %v608_v6 = vmul.f32 %v985_v59, %v985_v59  ;;  %v570_v7 = vadd.f32 %v985_v59, %v569_v2  ;;  %v638_v8 = vadd.f32 %v637_v5, %v607_v4  ;;  %v609_v9 = vmul.f32 %v1557_v60, %v1557_v60 }
 0x179   : > { %1064 = dma.vmem_to_hbm [thread:$0]  (%p1449_p12), %s1629_s12, 4096, %s1627_s28, %s665_s11, %s1324_s13, %s1324_s13, %s1325_s10   ;;  %v610_v14 = vmul.f32 %v1548_v57, %v1548_v57  ;;  %v611_v17 = vmul.f32 %v1567_v3, %v1567_v3  ;;  %v612_v21 = vmul.f32 %v1562_v1, %v1562_v1  ;;  %v621_v44 = vmul.f32 %v1619_v52, %v1619_v52 }
 0x17a   : > { %v639_v11 = vadd.f32 %v638_v8, %v608_v6  ;;  %v571_v13 = vadd.f32 %v570_v7, %v1557_v60  ;;  %v613_v60 = vmul.f32 %v1577_v12, %v1577_v12  ;;  %v623_v48 = vmul.f32 %v1636_v0, %v1636_v0  ;;  %s869_s12 = sshll.u32 %s1500_s14, 3  ;;  %s669_s28 = sand.u32 1, %s1374_s19  }
 0x17b   : > { %v624_v51 = vmul.f32 %v1631_v62, %v1631_v62  ;;  %s876_s11 = sshll.u32 %s1374_s19, 7  ;;  %s241_s9 = scalar_lea.vmem [#allocation8], %s869_s12 }
 0x17c   : > { %v640_v15 = vadd.f32 %v639_v11, %v609_v9  ;;  %v572_v16 = vadd.f32 %v1548_v57, %v571_v13  ;;  %v614_v57 = vmul.f32 %v1572_v10, %v1572_v10  ;;  %s704_s26 = sshll.u32 %s241_s9, 4  ;;  %s1716_s25 = scalar_lea.vmem [#allocation10], %s869_s12  ;;  %s1724_s26 = int_to_ptr.vmem [resolvable:$true] %s704_s26 }
 0x17d   : > { %s717_s24 = sshll.u32 %s1716_s25, 4  ;;  %s1722_s7 = scalar_lea.hbm %s1803_s3, %s876_s11  ;;  %s1731_s24 = int_to_ptr.vmem [resolvable:$true] %s717_s24 }
 0x17e   : > { %v573_v18 = vadd.f32 %v572_v16, %v1567_v3  ;;  %v641_v19 = vadd.f32 %v640_v15, %v610_v14  ;;  %v615_v3 = vmul.f32 %v1587_v22, %v1587_v22  ;;  %s1729_s29 = scalar_lea.hbm %s1804_s4, %s876_s11  ;;  %s1733_s21 = scalar_lea.sflag [#allocation9], %s669_s28 }
 0x17f   : > { %s1215_s23 = scalar_lea.vmem %s1724_s26, 128  ;;  %s1326_s13 = smov [#allocation8]  }
 0x180   : > { %v642_v23 = vadd.f32 %v641_v19, %v611_v17  ;;  %v574_v24 = vadd.f32 %v1562_v1, %v573_v18  ;;  %v616_v1 = vmul.f32 %v1582_v20, %v1582_v20  ;;  %p1216_p10 = scmp.ne.s32.totalorder %s1724_s26, %s1215_s23  ;;  %s1219_s10 = sshll.u32 %s1326_s13, 4  ;;  %s1220_s10 = int_to_ptr.vmem [resolvable:$false] %s1219_s10 }
 0x181   : > { %s1221_s12 = scalar_lea.vmem %s1220_s10, 256  ;;  %p1222_p7 = scmp.lt.s32.totalorder %s1724_s26, %s1220_s10 }
 0x182   : > { %v575_v25 = vadd.f32 %v574_v24, %v1577_v12  ;;  %v643_v26 = vadd.f32 %v642_v23, %v612_v21  ;;  %v617_v12 = vmul.f32 %v1597_v32, %v1597_v32  ;;  %p1217_p13 = pnand %p1216_p10, %p1449_p12  ;;  %p1223_p9 = scmp.lt.s32.totalorder %s1221_s12, %s1215_s23 }
 0x184   : > { %v644_v27 = vadd.f32 %v643_v26, %v613_v60  ;;  %v576_v28 = vadd.f32 %v1572_v10, %v575_v25  ;;  %v618_v10 = vmul.f32 %v1592_v30, %v1592_v30  ;;  %p1218_p3 = pneg %p1217_p13  ;;  %p1224_p1 = por %p1223_p9, %p1222_p7 }
 0x186   : > { %v577_v29 = vadd.f32 %v576_v28, %v1587_v22  ;;  %v645_v31 = vadd.f32 %v644_v27, %v614_v57  ;;  %v619_v22 = vmul.f32 %v1607_v42, %v1607_v42  ;;  %p1225_p0 = pnand %p1224_p1, %p1218_p3 }
 0x188   : > { %v646_v33 = vadd.f32 %v645_v31, %v615_v3  ;;  %v578_v34 = vadd.f32 %v1582_v20, %v577_v29  ;;  %v620_v20 = vmul.f32 %v1602_v40, %v1602_v40 }
 0x18a   : > { %v579_v35 = vadd.f32 %v578_v34, %v1597_v32  ;;  %v647_v36 = vadd.f32 %v646_v33, %v616_v1 }
 0x18c   : > { %v648_v37 = vadd.f32 %v647_v36, %v617_v12  ;;  %v580_v38 = vadd.f32 %v1592_v30, %v579_v35  ;;  %v622_v30 = vmul.f32 %v1612_v50, %v1612_v50 }
 0x18e   : > { %v581_v39 = vadd.f32 %v580_v38, %v1607_v42  ;;  %v649_v41 = vadd.f32 %v648_v37, %v618_v10 }
 0x190   : > { %v650_v43 = vadd.f32 %v649_v41, %v619_v22  ;;  %v582_v32 = vadd.f32 %v1602_v40, %v581_v39 }
 0x192   : > { %v583_v45 = vadd.f32 %v582_v32, %v1619_v52  ;;  %v651_v46 = vadd.f32 %v650_v43, %v620_v20 }
 0x194   : > { %v652_v47 = vadd.f32 %v651_v46, %v621_v44  ;;  %v584_v42 = vadd.f32 %v1612_v50, %v583_v45 }
 0x196   : > { %v585_v49 = vadd.f32 %v584_v42, %v1636_v0  ;;  %v653_v40 = vadd.f32 %v652_v47, %v622_v30 }
 0x198   : > { %v586_v52 = vadd.f32 %v1631_v62, %v585_v49  ;;  %v654_v53 = vadd.f32 %v653_v40, %v623_v48 }
 0x19a   : > { %v587_v54 = vrot.slane %v586_v52, 4  ;;  %v655_v55 = vadd.f32 %v654_v53, %v624_v51 }
 0x19c   : > { %v588_v56 = vadd.f32 %v587_v54, %v586_v52  ;;  %v656_v58 = vrot.slane %v655_v55, 4 }
 0x19e   : > { %v589_v50 = vrot.slane %v588_v56, 2  ;;  %v657_v59 = vadd.f32 %v656_v58, %v655_v55 }
 0x1a0   : > { %v590_v61 = vadd.f32 %v589_v50, %v588_v56  ;;  %v658_v63 = vrot.slane %v657_v59, 2 }
 0x1a2   : > { %v591_v0 = vrot.slane %v590_v61, 1  ;;  %v659_v2 = vadd.f32 %v658_v63, %v657_v59 }
 0x1a4   : > { %v592_v62 = vadd.f32 %v591_v0, %v590_v61  ;;  %v660_v4 = vrot.slane %v659_v2, 1 }
 0x1a6   : > { %v661_v5 = vadd.f32 %v660_v4, %v659_v2  ;;  %662 = vst [vmem:[%s241_s9] sm:$0xff] %v592_v62 }
 0x1a7   : > { %1228 = shalt.err (!%p1225_p0)
}
 0x1a8   : > { %s1229_s28 = scalar_lea.hbm %s1722_s7, 128  ;;  %s1233_s14 = scalar_lea.hbm %s1803_s3, 256 }
 0x1a9   : > { %p1230_p5 = scmp.ne.s32.totalorder %s1722_s7, %s1229_s28  ;;  %p1234_p4 = scmp.lt.u32.totalorder %s1722_s7, %s1803_s3 }
 0x1aa   : > { %p1235_p6 = scmp.lt.u32.totalorder %s1233_s14, %s1229_s28  ;;  %p1237_p10 = scmp.lt.u32.totalorder %s1229_s28, %s1722_s7 }
 0x1ab   : > { %p1231_p11 = pnand %p1230_p5, %p1449_p12 }
 0x1ac   : > { %p1236_p8 = por %p1235_p6, %p1234_p4 }
 0x1ad   : > { %p1232_p2 = pneg %p1231_p11 }
 0x1ae   : > { %p1238_p13 = por %p1237_p10, %p1236_p8 }
 0x1b0   : > { %p1239_p3 = pnand %p1238_p13, %p1232_p2 }
 0x1b2   : > { %1242 = shalt.err (!%p1239_p3)
}
 0x1b3   : > { %1065 = dma.vmem_to_hbm [thread:$0]  (%p1449_p12), %s1724_s26, 128, %s1722_s7, %s1733_s21   ;;  %663 = vst [vmem:[%s1716_s25] sm:$0xff] %v661_v5 }
 0x1b4   : > { %s1243_s8 = scalar_lea.vmem %s1731_s24, 128  ;;  %s1327_s23 = smov [#allocation10]  }
 0x1b5   : > { %p1244_p7 = scmp.ne.s32.totalorder %s1731_s24, %s1243_s8  ;;  %s1247_s13 = sshll.u32 %s1327_s23, 4  ;;  %s1248_s13 = int_to_ptr.vmem [resolvable:$false] %s1247_s13 }
 0x1b6   : > { %s1249_s10 = scalar_lea.vmem %s1248_s13, 256  ;;  %p1250_p0 = scmp.lt.s32.totalorder %s1731_s24, %s1248_s13 }
 0x1b7   : > { %p1245_p9 = pnand %p1244_p7, %p1449_p12  ;;  %p1251_p5 = scmp.lt.s32.totalorder %s1249_s10, %s1243_s8 }
 0x1b9   : > { %p1246_p1 = pneg %p1245_p9  ;;  %p1252_p11 = por %p1251_p5, %p1250_p0 }
 0x1bb   : > { %p1253_p2 = pnand %p1252_p11, %p1246_p1 }
 0x1bd   : > { %1256 = shalt.err (!%p1253_p2)
}
 0x1be   : > { %s1257_s26 = scalar_lea.hbm %s1729_s29, 128  ;;  %s1261_s12 = scalar_lea.hbm %s1804_s4, 256 }
 0x1bf   : > { %p1258_p4 = scmp.ne.s32.totalorder %s1729_s29, %s1257_s26  ;;  %p1262_p10 = scmp.lt.u32.totalorder %s1729_s29, %s1804_s4 }
 0x1c0   : > { %p1263_p13 = scmp.lt.u32.totalorder %s1261_s12, %s1257_s26  ;;  %p1265_p7 = scmp.lt.u32.totalorder %s1257_s26, %s1729_s29 }
 0x1c1   : > { %p1259_p6 = pnand %p1258_p4, %p1449_p12 }
 0x1c2   : > { %p1264_p3 = por %p1263_p13, %p1262_p10 }
 0x1c3   : > { %p1260_p8 = pneg %p1259_p6 }
 0x1c4   : > { %p1266_p9 = por %p1265_p7, %p1264_p3 }
 0x1c6   : > { %p1267_p1 = pnand %p1266_p9, %p1260_p8 }
 0x1c8   : > { %1270 = shalt.err (!%p1267_p1)
}
 0x1c9   : > { %1066 = dma.vmem_to_hbm [thread:$0]  (%p1449_p12), %s1731_s24, 128, %s1729_s29, %s1733_s21  }
 0x1ca PF: > { %s729_s9 = sand.u32 1, %s1305_s15   ;;  %p1819_p0 = scmp.ne.s32.totalorder %s1809_s22, 0 }
 0x1cb   : > { %p1820_p5 = scmp.ge.s32.totalorder %s1317_s18, 2  ;;  %s730_s14 = scalar_lea.sflag [#allocation4], %s729_s9 }
 0x1cd   : > { %p1079_p11 = pnand %p1820_p5, %p1819_p0 }
 0x1cf   : > { %1296 = dma.done.wait (!%p1079_p11), %s730_s14, 4096  }
 0x1d0   : > { %1298 = vsyncadd (!%p1079_p11), %s730_s14, 4294963200  ;;  %s738_s6 = sand.u32 1, %s858_s20  }
 0x1d1   : > { %s739_s19 = scalar_lea.sflag [#allocation9], %s738_s6 }
 0x1d2   : > { %1300 = dma.done.wait (!%p1079_p11), %s739_s19, 256  }
 0x1d3   : > { %1302 = vsyncadd (!%p1079_p11), %s739_s19, 4294967040  ;;  %p22_p12 = scmp.ge.s32.totalorder %s1411_s27, 4   ;;  %s1821_s15 = smov %s1309_s16 }
 0x1d4   : > { %s1822_s16 = smov %s1313_s17  ;;  %s1823_s17 = smov %s1445_s30 }
 0x1d5   : > { %s1824_s18 = smov %s1411_s27  ;;  %24 = sbr.rel (!%p22_p12) target bundleno = 8 (0x8), region = 109 }
 0x1dc   :  { %753 = vsyncpa [#allocation3], 1 }
 0x1dd   :  { %755 = vsyncpa [#allocation3 + $0x1], 1 }
 0x1de   :  { %756 = vsyncpa [#allocation6], 1 }
 0x1df   :  { %757 = vsyncpa [#allocation4], 1 }
 0x1e0   :  { %759 = vsyncpa [#allocation4 + $0x1], 1 }
 0x1e1   :  { %760 = vsyncpa [#allocation9], 1 }
 0x1e2   :  { %762 = vsyncpa [#allocation9 + $0x1], 1 }

</bundles_post_ra>
